<compile_context>
chip_gen: v5e
topology: v5e:2x2
jax: 0.10.0
libtpu: 0.0.40
codegen_flags: <defaults>
</compile_context>

<pallas_src>
import functools

import jax
import jax.numpy as jnp
from jax import lax
from jax.experimental import pallas as pl
from jax.experimental.pallas import tpu as pltpu

LATENT_DIM = 20
IN_DIM = 62
H1 = 256
H2 = 128
HEAD_DIM = 2 * LATENT_DIM  # fused mean || logvar head


def _round_up(x, m):
    return ((x + m - 1) // m) * m


def encoder_kernel(x_ref, w1_ref, w2_ref, wh_ref, b1_ref, b2_ref, bh_ref,
                   out_ref, *, sb, n_sub):
    """One batch tile, processed in `n_sub` sub-blocks of `sb` rows each.

    Per-sub-block live f32 intermediate is [sb, 256] (<=128 KiB at sb=128),
    so fc1 -> relu -> fc2 -> relu -> head stays vreg/VMEM friendly even when
    the outer batch tile TB is large.
    """

    def body(i, carry):
        r = pl.multiple_of(i * sb, sb)
        x = x_ref[pl.ds(r, sb), :]                       # bf16 [sb, 62]

        # fc1 + relu (bf16 operands, f32 accumulate)
        h = jnp.dot(x, w1_ref[...],
                    preferred_element_type=jnp.float32) + b1_ref[...]
        h = jnp.maximum(h, 0.0)

        # fc2 + relu
        h = jnp.dot(h.astype(jnp.bfloat16), w2_ref[...],
                    preferred_element_type=jnp.float32) + b2_ref[...]
        h = jnp.maximum(h, 0.0)

        # fused heads: [sb, 128] @ [128, 40] -> [sb, 40]  (mean || logvar)
        out_ref[pl.ds(r, sb), :] = (
            jnp.dot(h.astype(jnp.bfloat16), wh_ref[...],
                    preferred_element_type=jnp.float32) + bh_ref[...])
        return carry

    lax.fori_loop(0, n_sub, body, 0, unroll=True)


def encoder_forward(x, params, *, tb=1024):
    """x: [B, 62] (bfloat16 preferred; float32 is cast as a fallback).

    params: dict with
      w1 [62,256] bf16, w2 [256,128] bf16, wh [128,40] bf16 (pre-transposed [in,out])
      b1 [1,256]  f32,  b2 [1,128]  f32,  bh [1,40]  f32
    Returns (mean [B, 20], logvar [B, 20]) in float32.
    """
    B = x.shape[0]
    if x.dtype != jnp.bfloat16:
        # Prefer the producer emitting bf16; allow_input_fusion lets XLA fold
        # this convert into the pallas_call operand instead of an HBM round trip.
        x = x.astype(jnp.bfloat16)

    # Batch tile: >=2 grid steps when B allows (v7x megacore), forced multiple
    # of 16 (bf16 sublane packing) regardless of user `tb`, and a multiple of
    # the in-kernel sub-block size SB.
    tb = max(16, int(tb))
    TB = min(tb, _round_up(max(-(-B // 2), 1), 16))
    TB = _round_up(TB, 16)
    SB = min(128, TB)
    TB = _round_up(TB, SB)
    n_sub = TB // SB

    grid = (pl.cdiv(B, TB),)      # partial last block is edge-masked by Pallas

    const = lambda i: (0, 0)      # weights/biases: VMEM-resident across steps
    batch = lambda i: (i, 0)      # x / out: walk the batch axis

    flops = 2 * B * (IN_DIM * H1 + H1 * H2 + H2 * HEAD_DIM)
    bytes_accessed = (B * IN_DIM * 2                                  # x (bf16)
                      + (IN_DIM * H1 + H1 * H2 + H2 * HEAD_DIM) * 2   # weights (bf16)
                      + (H1 + H2 + HEAD_DIM) * 4                      # biases (f32)
                      + B * HEAD_DIM * 4)                             # out (f32)

    out = pl.pallas_call(
        functools.partial(encoder_kernel, sb=SB, n_sub=n_sub),
        out_shape=jax.ShapeDtypeStruct((B, HEAD_DIM), jnp.float32),
        grid=grid,
        in_specs=[
            pl.BlockSpec((TB, IN_DIM), batch),          # x (bf16)
            pl.BlockSpec((IN_DIM, H1), const),          # w1
            pl.BlockSpec((H1, H2), const),              # w2
            pl.BlockSpec((H2, HEAD_DIM), const),        # wh (mean || logvar)
            pl.BlockSpec((1, H1), const),               # b1
            pl.BlockSpec((1, H2), const),               # b2
            pl.BlockSpec((1, HEAD_DIM), const),         # bh
        ],
        out_specs=pl.BlockSpec((TB, HEAD_DIM), batch),
        compiler_params=pltpu.CompilerParams(
            dimension_semantics=("parallel",),          # megacore-shard on v7x
            allow_input_fusion=[True, False, False, False, False, False, False],
        ),
        cost_estimate=pl.CostEstimate(
            flops=flops, transcendentals=0, bytes_accessed=bytes_accessed),
    )(
        x,
        params["w1"], params["w2"], params["wh"],
        params["b1"], params["b2"], params["bh"],
    )

    return out[:, :LATENT_DIM], out[:, LATENT_DIM:]


def init_params(key):
    """Deterministic synthetic init (PyTorch-like uniform fan-in scaling)."""
    def linear(key, fan_in, fan_out):
        kw, kb = jax.random.split(key)
        bound = 1.0 / jnp.sqrt(fan_in)
        # stored as [in, out] (transpose of PyTorch's [out, in])
        w = jax.random.uniform(kw, (fan_in, fan_out), jnp.float32, -bound, bound)
        b = jax.random.uniform(kb, (1, fan_out), jnp.float32, -bound, bound)
        return w, b

    k1, k2, k3, k4 = jax.random.split(key, 4)
    w1, b1 = linear(k1, IN_DIM, H1)
    w2, b2 = linear(k2, H1, H2)
    wm, bm = linear(k3, H2, LATENT_DIM)
    wl, bl = linear(k4, H2, LATENT_DIM)

    # Fuse the two heads into one [H2, 40] weight / [1, 40] bias;
    # weights kept in bf16 (MXU-native), biases stay f32.
    wh = jnp.concatenate([wm, wl], axis=1)
    bh = jnp.concatenate([bm, bl], axis=1)
    return dict(
        w1=w1.astype(jnp.bfloat16), b1=b1,
        w2=w2.astype(jnp.bfloat16), b2=b2,
        wh=wh.astype(jnp.bfloat16), bh=bh,
    )


def reference_forward(x, p):
    """Pure-JAX reference mimicking the kernel's bf16-operand / f32-accum math."""
    def f32(a):
        return a.astype(jnp.float32)

    def rebf(a):
        return a.astype(jnp.bfloat16).astype(jnp.float32)

    h = jnp.maximum(f32(x) @ f32(p["w1"]) + p["b1"], 0.0)
    h = jnp.maximum(rebf(h) @ f32(p["w2"]) + p["b2"], 0.0)
    out = rebf(h) @ f32(p["wh"]) + p["bh"]
    return out[:, :LATENT_DIM], out[:, LATENT_DIM:]


if __name__ == "__main__":
    key = jax.random.PRNGKey(0)
    kx, kp, kx2 = jax.random.split(key, 3)
    params = init_params(kp)

    # Case 1: tiny batch, tb=16 -> TB=16, 2 grid steps, partial (edge-masked)
    # last block, single in-kernel sub-block.
    B = 20
    x = jax.random.normal(kx, (B, IN_DIM), jnp.float32).astype(jnp.bfloat16)
    fwd = jax.jit(functools.partial(encoder_forward, tb=16))
    mean, logvar = fwd(x, params)
    jax.block_until_ready((mean, logvar))

    ref_mean, ref_logvar = reference_forward(x, params)
    assert mean.shape == (B, LATENT_DIM) and logvar.shape == (B, LATENT_DIM)
    assert jnp.allclose(mean, ref_mean, atol=2e-3, rtol=2e-3)
    assert jnp.allclose(logvar, ref_logvar, atol=2e-3, rtol=2e-3)

    # Case 2: default tb -> TB=256, SB=128, n_sub=2 inner sub-block loop,
    # 2 grid steps with a partial last block.
    B2 = 300
    x2 = jax.random.normal(kx2, (B2, IN_DIM), jnp.float32).astype(jnp.bfloat16)
    mean2, logvar2 = jax.jit(encoder_forward)(x2, params)
    jax.block_until_ready((mean2, logvar2))

    ref_mean2, ref_logvar2 = reference_forward(x2, params)
    assert mean2.shape == (B2, LATENT_DIM) and logvar2.shape == (B2, LATENT_DIM)
    assert jnp.allclose(mean2, ref_mean2, atol=2e-3, rtol=2e-3)
    assert jnp.allclose(logvar2, ref_logvar2, atol=2e-3, rtol=2e-3)

    print("KERNEL_OK")
</pallas_src>

<mosaic_0001>
module attributes {stable_mosaic.version = 11 : i64} {
  func.func @encoder_kernel(%arg0: i32, %arg1: memref<16x62xbf16, #tpu.memory_space<vmem>>, %arg2: memref<62x256xbf16, #tpu.memory_space<vmem>>, %arg3: memref<256x128xbf16, #tpu.memory_space<vmem>>, %arg4: memref<128x40xbf16, #tpu.memory_space<vmem>>, %arg5: memref<1x256xf32, #tpu.memory_space<vmem>>, %arg6: memref<1x128xf32, #tpu.memory_space<vmem>>, %arg7: memref<1x40xf32, #tpu.memory_space<vmem>>, %arg8: memref<16x40xf32, #tpu.memory_space<vmem>>) attributes {dimension_semantics = [#tpu.dimension_semantics<parallel>], iteration_bounds = array<i64: 2>, scalar_prefetch = 0 : i64, scratch_operands = 0 : i64, tpu.core_type = #tpu.core_type<tc>, window_params = [{transform_indices = @transform_0, window_bounds = array<i64: 16, 62>}, {pipeline_mode = #tpu.pipeline_mode<synchronous>, transform_indices = @transform_1, window_bounds = array<i64: 62, 256>}, {pipeline_mode = #tpu.pipeline_mode<synchronous>, transform_indices = @transform_2, window_bounds = array<i64: 256, 128>}, {pipeline_mode = #tpu.pipeline_mode<synchronous>, transform_indices = @transform_3, window_bounds = array<i64: 128, 40>}, {pipeline_mode = #tpu.pipeline_mode<synchronous>, transform_indices = @transform_4, window_bounds = array<i64: 1, 256>}, {pipeline_mode = #tpu.pipeline_mode<synchronous>, transform_indices = @transform_5, window_bounds = array<i64: 1, 128>}, {pipeline_mode = #tpu.pipeline_mode<synchronous>, transform_indices = @transform_6, window_bounds = array<i64: 1, 40>}, {transform_indices = @transform_7, window_bounds = array<i64: 16, 40>}]} {
    %c0_i32 = arith.constant 0 : i32
    %c16_i32 = arith.constant 16 : i32
    %0 = arith.muli %c0_i32, %c16_i32 : i32
    %1 = tpu.assume_multiple %0, 16 : i32
    %2 = arith.index_cast %1 : i32 to index
    %c0 = arith.constant 0 : index
    %3 = vector.load %arg1[%2, %c0] : memref<16x62xbf16, #tpu.memory_space<vmem>>, vector<16x62xbf16>
    %c0_0 = arith.constant 0 : index
    %c0_1 = arith.constant 0 : index
    %4 = vector.load %arg2[%c0_0, %c0_1] : memref<62x256xbf16, #tpu.memory_space<vmem>>, vector<62x256xbf16>
    %cst = arith.constant dense<0.000000e+00> : vector<16x256xf32>
    %5 = tpu.matmul %3, %4, %cst {dimension_numbers = #tpu.dot_dimension_numbers<[1], [0], [0], [1], [0, 0, 1, 1], [], []>} : vector<16x62xbf16>, vector<62x256xbf16>, vector<16x256xf32> -> vector<16x256xf32>
    %c0_2 = arith.constant 0 : index
    %c0_3 = arith.constant 0 : index
    %6 = vector.load %arg5[%c0_2, %c0_3] : memref<1x256xf32, #tpu.memory_space<vmem>>, vector<1x256xf32>
    %7 = vector.broadcast %6 : vector<1x256xf32> to vector<16x256xf32>
    %8 = arith.addf %5, %7 : vector<16x256xf32>
    %cst_4 = arith.constant 0.000000e+00 : f32
    %9 = vector.broadcast %cst_4 : f32 to vector<16x256xf32>
    %10 = arith.maximumf %8, %9 : vector<16x256xf32>
    %11 = arith.truncf %10 : vector<16x256xf32> to vector<16x256xbf16>
    %c0_5 = arith.constant 0 : index
    %c0_6 = arith.constant 0 : index
    %12 = vector.load %arg3[%c0_5, %c0_6] : memref<256x128xbf16, #tpu.memory_space<vmem>>, vector<256x128xbf16>
    %cst_7 = arith.constant dense<0.000000e+00> : vector<16x128xf32>
    %13 = tpu.matmul %11, %12, %cst_7 {dimension_numbers = #tpu.dot_dimension_numbers<[1], [0], [0], [1], [0, 0, 1, 1], [], []>} : vector<16x256xbf16>, vector<256x128xbf16>, vector<16x128xf32> -> vector<16x128xf32>
    %c0_8 = arith.constant 0 : index
    %c0_9 = arith.constant 0 : index
    %14 = vector.load %arg6[%c0_8, %c0_9] : memref<1x128xf32, #tpu.memory_space<vmem>>, vector<1x128xf32>
    %15 = vector.broadcast %14 : vector<1x128xf32> to vector<16x128xf32>
    %16 = arith.addf %13, %15 : vector<16x128xf32>
    %cst_10 = arith.constant 0.000000e+00 : f32
    %17 = vector.broadcast %cst_10 : f32 to vector<16x128xf32>
    %18 = arith.maximumf %16, %17 : vector<16x128xf32>
    %19 = arith.truncf %18 : vector<16x128xf32> to vector<16x128xbf16>
    %c0_11 = arith.constant 0 : index
    %c0_12 = arith.constant 0 : index
    %20 = vector.load %arg4[%c0_11, %c0_12] : memref<128x40xbf16, #tpu.memory_space<vmem>>, vector<128x40xbf16>
    %cst_13 = arith.constant dense<0.000000e+00> : vector<16x40xf32>
    %21 = tpu.matmul %19, %20, %cst_13 {dimension_numbers = #tpu.dot_dimension_numbers<[1], [0], [0], [1], [0, 0, 1, 1], [], []>} : vector<16x128xbf16>, vector<128x40xbf16>, vector<16x40xf32> -> vector<16x40xf32>
    %c0_14 = arith.constant 0 : index
    %c0_15 = arith.constant 0 : index
    %22 = vector.load %arg7[%c0_14, %c0_15] : memref<1x40xf32, #tpu.memory_space<vmem>>, vector<1x40xf32>
    %23 = vector.broadcast %22 : vector<1x40xf32> to vector<16x40xf32>
    %24 = arith.addf %21, %23 : vector<16x40xf32>
    %25 = arith.index_cast %1 : i32 to index
    %c0_16 = arith.constant 0 : index
    %26 = vector.load %arg8[%25, %c0_16] : memref<16x40xf32, #tpu.memory_space<vmem>>, vector<16x40xf32>
    tpu.vector_store %arg8[%25, %c0_16], %24 {strides = array<i32>} : memref<16x40xf32, #tpu.memory_space<vmem>>, vector<16x40xf32>,
    %c1_i32 = arith.constant 1 : i32
    return
  }
  func.func @transform_0(%arg0: i32) -> (i32, i32) {
    %c0_i32 = arith.constant 0 : i32
    %c0_i32_0 = arith.constant 0 : i32
    return %arg0, %c0_i32 : i32, i32
  }
  func.func @transform_1(%arg0: i32) -> (i32, i32) {
    %c0_i32 = arith.constant 0 : i32
    %c0_i32_0 = arith.constant 0 : i32
    %c0_i32_1 = arith.constant 0 : i32
    return %c0_i32, %c0_i32_0 : i32, i32
  }
  func.func @transform_2(%arg0: i32) -> (i32, i32) {
    %c0_i32 = arith.constant 0 : i32
    %c0_i32_0 = arith.constant 0 : i32
    %c0_i32_1 = arith.constant 0 : i32
    return %c0_i32, %c0_i32_0 : i32, i32
  }
  func.func @transform_3(%arg0: i32) -> (i32, i32) {
    %c0_i32 = arith.constant 0 : i32
    %c0_i32_0 = arith.constant 0 : i32
    %c0_i32_1 = arith.constant 0 : i32
    return %c0_i32, %c0_i32_0 : i32, i32
  }
  func.func @transform_4(%arg0: i32) -> (i32, i32) {
    %c0_i32 = arith.constant 0 : i32
    %c0_i32_0 = arith.constant 0 : i32
    %c0_i32_1 = arith.constant 0 : i32
    return %c0_i32, %c0_i32_0 : i32, i32
  }
  func.func @transform_5(%arg0: i32) -> (i32, i32) {
    %c0_i32 = arith.constant 0 : i32
    %c0_i32_0 = arith.constant 0 : i32
    %c0_i32_1 = arith.constant 0 : i32
    return %c0_i32, %c0_i32_0 : i32, i32
  }
  func.func @transform_6(%arg0: i32) -> (i32, i32) {
    %c0_i32 = arith.constant 0 : i32
    %c0_i32_0 = arith.constant 0 : i32
    %c0_i32_1 = arith.constant 0 : i32
    return %c0_i32, %c0_i32_0 : i32, i32
  }
  func.func @transform_7(%arg0: i32) -> (i32, i32) {
    %c0_i32 = arith.constant 0 : i32
    %c0_i32_0 = arith.constant 0 : i32
    return %arg0, %c0_i32 : i32, i32
  }
}

</mosaic_0001>

<bundles_post_ra>
// kernel: encoder_forward.1
= control target key start
LH: loop header
LB: loop body
LE: loop exit
PB: predicated region body
PF: predicated region fallthrough
CT: control target
= control target key end

     0   :  { %12 = vsyncpa [#allocation3], 0  ;;  %s1366_s24 = smov 0   ;;  %s1368_s25 = smov 0   ;;  %s1542_s0 = inlined_call_operand.vmem [shape: bf16[20,62], index: 0, kind: input, shape index: {}]   ;;  %s1543_s1 = inlined_call_operand.vmem [shape: bf16[62,256], index: 1, kind: input, shape index: {}]   ;;  %s1544_s2 = inlined_call_operand.hbm [shape: bf16[256,128], index: 2, kind: input, shape index: {}]   ;;  %s1545_s3 = inlined_call_operand.vmem [shape: bf16[128,40], index: 3, kind: input, shape index: {}]   ;;  %s1546_s4 = inlined_call_operand.vmem [shape: f32[1,256], index: 4, kind: input, shape index: {}]   ;;  %s1547_s5 = inlined_call_operand.vmem [shape: f32[1,128], index: 5, kind: input, shape index: {}]   ;;  %s1548_s6 = inlined_call_operand.vmem [shape: f32[1,40], index: 6, kind: input, shape index: {}]   ;;  %s1549_s7 = inlined_call_operand.vmem [shape: f32[20,40], index: 7, kind: output, shape index: {}]  }
   0x1   :  { %s1370_s26 = smov 0  }
   0x2 LB: > { %s1379_s27 = sadd.s32 4294967295, %s1289_s26   ;;  %s1381_s28 = sadd.s32 1, %s1289_s26   ;;  %s1289_s26 = sphi %s1370_s26, %s1553_s26   ;;  %s1285_s25 = sphi %s1368_s25, %s1552_s25   ;;  %s1281_s24 = sphi %s1366_s24, %s1551_s24  }
   0x3   : > { %s174_s29 = ssub.s32 %s1289_s26, %s1381_s28  ;;  %s177_s30 = sadd.s32 1, %s1285_s25 }
   0x4   : > { %p175_p0 = scmp.eq.s32.totalorder %s174_s29, 0  ;;  %p187_p1 = scmp.ne.s32.totalorder %s1285_s25, %s1281_s24 }
   0x5   : > { %p188_p2 = scmp.eq.s32.totalorder %s1379_s27, 1  ;;  %p903_p3 = scmp.ge.s32.totalorder %s1289_s26, 1 }
   0x6   : > { %s1389_s8 = scalar_select %p175_p0, %s1285_s25, %s177_s30  }
   0x7   : > { %p1391_p4 = por %p188_p2, %p187_p1  ;;  %p201_p5 = scmp.lt.s32.totalorder %s1289_s26, 3 }
   0x8   : > { %p1106_p6 = scmp.eq.s32.totalorder %s1379_s27, 0  ;;  %s215_s12 = sshll.u32 %s1544_s2, 4  ;;  %s216_s12 = int_to_ptr.hbm [resolvable:$true] %s215_s12 }
   0x9   : > { %p202_p7 = pnand %p903_p3, %p201_p5  ;;  %s1323_s13 = smov [#allocation2]  }
   0xa   : > { %s217_s14 = sshll.u32 %s1323_s13, 4  ;;  %s1324_s15 = smov 64   ;;  %s218_s14 = int_to_ptr.vmem [resolvable:$true] %s217_s14 }
   0xb   : > { %p1102_p8 = pneg %p202_p7  ;;  %s1325_s16 = smov 4  }
   0xc   : > { %262 = sbr.rel (%p202_p7) target bundleno = 516 (0x204), region = 48 }
   0xd   : > { %p1103_p9 = pnand %p1106_p6, %p1102_p8 }
   0xf   : > { %1105 = dma.hbm_to_vmem [thread:$0]  (!%p1103_p9), %s216_s12, 2048, %s218_s14, [#allocation3], %s1324_s15, %s1324_s15, %s1325_s16  }
  0x11   : > { %1276 = dma.done.wait (%p1106_p6), [#allocation3], 2048  }
  0x12   : > { %1278 = vsyncadd (%p1106_p6), [#allocation3], 4294965248  ;;  %s1406_s17 = sshll.u32 %s1379_s27, 1  ;;  %v941_v0 = vld [vmem:[%s1543_s1 + $0x30] sm:$0xf]  ;;  %vm381_vm0 = vcmask 1046528  }
  0x13   : > { %v1070_v1 = vld [vmem:[%s1543_s1 + $0x34] sm:$0x70]  ;;  %v933_v3 = vld [vmem:[%s1543_s1 + $0x20] sm:$0xf]  ;;  %v1068_v4 = vld [vmem:[%s1543_s1 + $0x24] sm:$0xf0] }
  0x14   : > { %v942_v2 = vor.u32 %v1070_v1, %v941_v0  ;;  %p303_p10 = scmp.lt.s32.totalorder %s1406_s17, 2  ;;  %v1078_v6 = vld [vmem:[#allocation2 + $0x38] sm:$0xff]  ;;  %v934_v7 = vor.u32 %v1068_v4, %v933_v3  ;;  %v925_v8 = vld [vmem:[%s1543_s1 + $0x10] sm:$0xf]  ;;  %v1069_v10 = vld [vmem:[%s1543_s1 + $0x34] sm:$0xf] }
  0x15   : > { %v1066_v9 = vld [vmem:[%s1543_s1 + $0x14] sm:$0xf0]  ;;  %554 = vmatpush.bf16.msra.mxu2 %v1078_v6  ;;  %v1077_v11 = vld [vmem:[#allocation2 + $0x30] sm:$0xff]  ;;  %v943_v12 = vld [vmem:[%s1543_s1 + $0x38] sm:$0x70]  ;;  %vm377_vm1 = vcmask 506880  }
  0x16   : > { %v383_v5 = vsel %vm381_vm0, %v942_v2, 0  ;;  %s304_s13 = scalar_select %p303_p10, %s1406_s17, 2  ;;  %v926_v13 = vor.u32 %v1066_v9, %v925_v8  ;;  %v917_v14 = vld [vmem:[%s1543_s1] sm:$0xf]  ;;  %v1064_v15 = vld [vmem:[%s1543_s1 + $0x4] sm:$0xf0]  ;;  %v946_v17 = vor.u32 %v1069_v10, %v943_v12 }
  0x17   : > { %392 = vmatpush.bf16.msra.mxu1 %v383_v5  ;;  %v1076_v16 = vld [vmem:[#allocation2 + $0x28] sm:$0xff]  ;;  %v918_v18 = vor.u32 %v1064_v15, %v917_v14  ;;  %v1075_v19 = vld [vmem:[#allocation2 + $0x20] sm:$0xff]  ;;  %v1065_v25 = vld [vmem:[%s1543_s1 + $0x14] sm:$0xf]  ;;  %s295_s10 = sand.u32 1, %s1281_s24   ;;  %vm667_vm2 = vcmask 326656  }
  0x18   : > { %s910_s23 = sshll.u32 %s304_s13, 2  ;;  %v386_v20 = vsel %vm381_vm0, %v946_v17, 0  ;;  %v1067_v21 = vld [vmem:[%s1543_s1 + $0x24] sm:$0xf]  ;;  %v935_v22 = vld [vmem:[%s1543_s1 + $0x28] sm:$0xf0] }
  0x19   : > { %555 = vmatpush.bf16.msra.mxu2 %v1077_v11  ;;  %s306_s30 = scalar_lea.vmem %s1542_s0, %s910_s23  ;;  %v938_v24 = vor.u32 %v1067_v21, %v935_v22  ;;  %v927_v26 = vld [vmem:[%s1543_s1 + $0x18] sm:$0xf0]  ;;  %v1063_v28 = vld [vmem:[%s1543_s1 + $0x4] sm:$0xf]  ;;  %v919_v29 = vld [vmem:[%s1543_s1 + $0x8] sm:$0xf0] }
  0x1a   : > { %v1062_v23 = vld [vmem:[%s306_s30] sm:$0xff]  ;;  %v930_v27 = vor.u32 %v1065_v25, %v927_v26  ;;  %v922_v30 = vor.u32 %v1063_v28, %v919_v29  ;;  %v1074_v31 = vld [vmem:[#allocation2 + $0x18] sm:$0xff]  ;;  %v1073_v33 = vld [vmem:[#allocation2 + $0x10] sm:$0xff]  ;;  %s908_s11 = sshll.u32 %s295_s10, 4  ;;  %s678_s24 = ssub.s32 (%p1391_p4), 3, %s1406_s17 }
  0x1b   : > { %393 = vmatpush.bf16.msra.mxu1 %v934_v7  ;;  %v1086_v32 = vld [vmem:[#allocation2 + $0x78] sm:$0xff]  ;;  %v1085_v34 = vld [vmem:[#allocation2 + $0x70] sm:$0xff]  ;;  %v1072_v35 = vld [vmem:[#allocation2 + $0x8] sm:$0xff]  ;;  %s1497_s13 = scalar_lea.vmem [#allocation4], %s908_s11   ;;  %s1095_s15 = sshll.u32 (%p1391_p4), %s1379_s27, 4 }
  0x1c   : > { %568 = vmatpush.bf16.msra.mxu3 %v1086_v32  ;;  %v1084_v36 = vld [vmem:[#allocation2 + $0x68] sm:$0xff]  ;;  %v1071_v37 = vld [vmem:[#allocation2] sm:$0xff]  ;;  %v1082_v39 = vld [vmem:[#allocation2 + $0x58] sm:$0xff]  ;;  %p679_p11 = scmp.lt.s32.totalorder (%p1391_p4), %s678_s24, 2  ;;  %s1508_s19 = scalar_lea.vmem (%p1391_p4), %s1549_s7, %s1095_s15  }
  0x1d   : > { %556 = vmatpush.bf16.msra.mxu2 %v1076_v16  ;;  %v1083_v38 = vld [vmem:[#allocation2 + $0x60] sm:$0xff]  ;;  %v1081_v40 = vld [vmem:[#allocation2 + $0x50] sm:$0xff]  ;;  %v1080_v41 = vld [vmem:[#allocation2 + $0x48] sm:$0xff] }
  0x1e   : > { %v1079_v42 = vld [vmem:[#allocation2 + $0x40] sm:$0xff]  ;;  %v1094_v60 = vld [vmem:[%s1545_s3 + $0x38] sm:$0xff]  ;;  %v1093_v61 = vld [vmem:[%s1545_s3 + $0x30] sm:$0xff] }
  0x1f   : > { %394 = vmatpush.bf16.msra.mxu1 %v926_v13  ;;  %v328_v43 = vld [vmem:[%s1546_s4] sm:$0x3]  ;;  %653 = vmatpush.bf16.msra.mxu0 %v1094_v60  ;;  %v1092_v62 = vld [vmem:[%s1545_s3 + $0x28] sm:$0xff]  ;;  %v1090_v0 = vld [vmem:[%s1545_s3 + $0x18] sm:$0xff] }
  0x20   : > { %569 = vmatpush.bf16.msra.mxu3 %v1085_v34  ;;  %v330_v45 = vperm.slane %v328_v43, 0  ;;  %v331_v53 = vperm.slane %v328_v43, 1  ;;  %v1091_v63 = vld [vmem:[%s1545_s3 + $0x20] sm:$0xff]  ;;  %v1089_v1 = vld [vmem:[%s1545_s3 + $0x10] sm:$0xff]  ;;  %v1088_v2 = vld [vmem:[%s1545_s3 + $0x8] sm:$0xff] }
  0x21   : > { %557 = vmatpush.bf16.msra.mxu2 %v1075_v19  ;;  %v1087_v3 = vld [vmem:[%s1545_s3] sm:$0xff] }
  0x22   : > { %v1199_v6 = vld [vmem:[%s1547_s5] ss:$0 sm:$0xff] }
  0x23   : > { %395 = vmatpush.bf16.msra.mxu1 %v918_v18  ;;  %654 = vmatpush.bf16.msra.mxu0 %v1093_v61  ;;  %v1200_v16 = vld [vmem:[%s1548_s6] ss:$0 sm:$0xff] }
  0x24   : > { %570 = vmatpush.bf16.msra.mxu3 %v1084_v36 }
  0x25   : > { %558 = vmatpush.bf16.msra.mxu2 %v1074_v31 }
  0x26   : > { %947 = vmatmul.msk.bf16.vlgmr.msra.gmra.mxu1 %vm377_vm1, %v1062_v23 }
  0x27   : > { %406 = vmatpush.bf16.msrb.mxu1 %v386_v20  ;;  %655 = vmatpush.bf16.msra.mxu0 %v1092_v62 }
  0x28   : > { %571 = vmatpush.bf16.msra.mxu3 %v1083_v38 }
  0x29   : > { %559 = vmatpush.bf16.msra.mxu2 %v1073_v33 }
  0x2b   : > { %407 = vmatpush.bf16.msrb.mxu1 %v938_v24  ;;  %656 = vmatpush.bf16.msra.mxu0 %v1091_v63 }
  0x2c   : > { %572 = vmatpush.bf16.msra.mxu3 %v1082_v39 }
  0x2d   : > { %560 = vmatpush.bf16.msra.mxu2 %v1072_v35 }
  0x2f   : > { %408 = vmatpush.bf16.msrb.mxu1 %v930_v27  ;;  %657 = vmatpush.bf16.msra.mxu0 %v1090_v0 }
  0x30   : > { %573 = vmatpush.bf16.msra.mxu3 %v1081_v40 }
  0x31   : > { %561 = vmatpush.bf16.msra.mxu2 %v1071_v37 }
  0x33   : > { %409 = vmatpush.bf16.msrb.mxu1 %v922_v30  ;;  %658 = vmatpush.bf16.msra.mxu0 %v1089_v1 }
  0x34   : > { %574 = vmatpush.bf16.msra.mxu3 %v1080_v41 }
  0x36   : > { %948 = vmatmul.msk.bf16.vlgmr.msrb.gmra.mxu1 %vm377_vm1, %v1062_v23 }
  0x37   : > { %659 = vmatpush.bf16.msra.mxu0 %v1088_v2 }
  0x38   : > { %575 = vmatpush.bf16.msra.mxu3 %v1079_v42 }
  0x3b   : > { %660 = vmatpush.bf16.msra.mxu0 %v1087_v3 }
  0xa3   : > { %v397_v44 = vpop.f32.mrf.mxu1 }
  0xa4   : > { %v398_v46 = vadd.f32 %v397_v44, %v330_v45 }
  0xa6   : > { %v416_v49 = vmax.f32 %v398_v46, 0.0 }
  0xab   : > { %v399_v47 = vpop.f32.mrf.mxu1 }
  0xac   : > { %v400_v48 = vadd.f32 %v399_v47, %v330_v45 }
  0xae   : > { %v418_v50 = vmax.f32 %v400_v48, 0.0 }
  0xb0   : > { %v420_v51 = vpack.c.bf16 %v418_v50, %v416_v49 }
  0xb2   : > { %562 = vmatmul.bf16.vlgmr.msra.gmra.mxu2 %v420_v51 }
  0xb3   : > { %v411_v52 = vpop.f32.mrf.mxu1 }
  0xb4   : > { %v412_v54 = vadd.f32 %v411_v52, %v331_v53 }
  0xb6   : > { %v417_v57 = vmax.f32 %v412_v54, 0.0 }
  0xbb   : > { %v413_v55 = vpop.f32.mrf.mxu1 }
  0xbc   : > { %v414_v56 = vadd.f32 %v413_v55, %v331_v53 }
  0xbe   : > { %v419_v58 = vmax.f32 %v414_v56, 0.0 }
  0xc0   : > { %v421_v59 = vpack.c.bf16 %v419_v58, %v417_v57 }
  0xc2   : > { %576 = vmatmul.bf16.vlgmr.msra.gmra.mxu3 %v421_v59 }
 0x135   : > { %v563_v4 = vpop.f32.mrf.mxu2 }
 0x136   : > { %v564_v8 = vadd.f32 %v1199_v6, %v563_v4 }
 0x13d   : > { %v565_v7 = vpop.f32.mrf.mxu2 }
 0x13e   : > { %v566_v9 = vadd.f32 %v1199_v6, %v565_v7 }
 0x145   : > { %v577_v5 = vpop.f32.mrf.mxu3 }
 0x146   : > { %v578_v10 = vadd.f32 %v577_v5, %v564_v8 }
 0x148   : > { %v582_v13 = vmax.f32 %v578_v10, 0.0 }
 0x14d   : > { %v579_v11 = vpop.f32.mrf.mxu3 }
 0x14e   : > { %v580_v12 = vadd.f32 %v579_v11, %v566_v9 }
 0x150   : > { %v583_v14 = vmax.f32 %v580_v12, 0.0 }
 0x152   : > { %v584_v15 = vpack.c.bf16 %v583_v14, %v582_v13 }
 0x154   : > { %661 = vmatmul.bf16.vlgmr.msra.gmra.mxu0 %v584_v15 }
 0x1d1   : > { %v662_v17 = vpop.f32.mrf.mxu0 }
 0x1d2   : > { %v663_v18 = vadd.f32 %v1200_v16, %v662_v17 }
 0x1d4   : > { %668 = vst.msk [vmem:[%s1497_s13] sm:$0xff] %vm667_vm2, %v663_v18 }
 0x1d8   : > { %676 = sbr.rel (!%p1391_p4) target bundleno = 516 (0x204), region = 56 }
 0x1d9   : > { %v664_v19 = vpop.f32.mrf.mxu0 }
 0x1da   : > { %v665_v20 = vadd.f32 %v1200_v16, %v664_v19 }
 0x1dc   : > { %669 = vst.msk [vmem:[%s1497_s13 + $0x8] sm:$0xff] %vm667_vm2, %v665_v20 }
 0x1dd   : > { %s1555_s24 = smov (!%p679_p11, %s678_s24), 2 }
 0x1de   : > { %s1047_s20 = sshll.u32 %s1555_s24, 3 }
 0x1df   : > { %p1050_p12 = scmp.eq.s32.totalorder %s1047_s20, 0 }
 0x1e0   : > { %s1514_s21 = sshrl.u32 (!%p1050_p12), %s1555_s24, 1 }
 0x1e1   : > { %687 = sbr.rel (%p1050_p12) target bundleno = 516 (0x204), region = 60  ;;  %p1051_p13 = scmp.le.s32.totalorder (!%p1050_p12), %s1514_s21, 0 }
 0x1e6   : > { %849 = sbr.rel (%p1051_p13) target bundleno = 499 (0x1f3), region = 137  ;;  %s1291_s27 = smov (!%p1051_p13), %s1508_s19  }
 0x1e7   : > { %s1295_s9 = smov (!%p1051_p13), %s1497_s13   ;;  %s1299_s17 = smov (!%p1051_p13), 0  }
 0x1e8   : > { %s1303_s22 = smov (!%p1051_p13), 0  }
 0x1eb LB: >> { %v752_v21 = vld [vmem:[%s1297_s9] sm:$0xff]  ;;  %v754_v22 = vld [vmem:[%s1297_s9 + $0x8] sm:$0xff]  ;;  %s756_s23 = sadd.s32 1, %s1301_s17  ;;  %s746_s22 = sadd.s32 1, %s1305_s22   ;;  %s1305_s22 = sphi %s1303_s22, %s746_s22   ;;  %s1301_s17 = sphi %s1299_s17, %s1300_s17   ;;  %s1297_s9 = sphi %s1295_s9, %s761_s9   ;;  %s1293_s27 = sphi %s1291_s27, %s762_s27  }
 0x1ec   : >> { %753 = vst [vmem:[%s1293_s27] sm:$0xff] %v752_v21  ;;  %p757_p0 = scmp.ge.s32.totalorder %s756_s23, %s1514_s21  ;;  %p745_p1 = scmp.ge.s32.totalorder %s746_s22, %s1514_s21 }
 0x1ed   : >> { %755 = vst [vmem:[%s1293_s27 + $0x8] sm:$0xff] %v754_v22 }
 0x1ee   : >> { %s1557_s23 = smov (%p757_p0, %s756_s23), 0  ;;  %748 = sbr.rel (!%p745_p1) target bundleno = 491 (0x1eb), region = 143 }
 0x1ef   : >> { %s1052_s26 = sshll.u32 %s1557_s23, 4  ;;  %s1300_s17 = smov %s1557_s23  }
 0x1f0   : >> { %s761_s9 = scalar_lea.vmem %s1497_s13, %s1052_s26 [#allocation4]   ;;  %s762_s27 = scalar_lea.vmem %s1508_s19, %s1052_s26  }
 0x1f3 PF: > { %s1524_s29 = sand.u32 1, %s1555_s24   ;;  %s1096_s30 = sshll.u32 %s1514_s21, 4 }
 0x1f4   : > { %s767_s10 = scalar_lea.vmem %s1497_s13, %s1096_s30 [#allocation4]   ;;  %s769_s11 = scalar_lea.vmem %s1508_s19, %s1096_s30  }
 0x1f5   : > { %p1057_p2 = scmp.le.s32.totalorder %s1524_s29, 0 }
 0x1f6   : > { %s1307_s12 = smov (!%p1057_p2), %s769_s11   ;;  %s1311_s14 = smov (!%p1057_p2), %s767_s10  }
 0x1f7   : > { %863 = sbr.rel (%p1057_p2) target bundleno = 516 (0x204), region = 148  ;;  %s1315_s15 = smov (!%p1057_p2), 0  }
 0x1f8   : > { %s1319_s16 = smov (!%p1057_p2), 0  }
 0x1fc LB: >> { %v779_v23 = vld [vmem:[%s1313_s14] sm:$0xff]  ;;  %s781_s24 = sadd.s32 1, %s1317_s15  ;;  %s773_s16 = sadd.s32 1, %s1321_s16   ;;  %s1321_s16 = sphi %s1319_s16, %s773_s16   ;;  %s1317_s15 = sphi %s1315_s15, %s1316_s15   ;;  %s1313_s14 = sphi %s1311_s14, %s786_s14   ;;  %s1309_s12 = sphi %s1307_s12, %s787_s12  }
 0x1fd   : >> { %780 = vst [vmem:[%s1309_s12] sm:$0xff] %v779_v23  ;;  %p782_p3 = scmp.ge.s32.totalorder %s781_s24, %s1524_s29  ;;  %p772_p4 = scmp.ge.s32.totalorder %s773_s16, %s1524_s29 }
 0x1ff   : >> { %s1559_s24 = smov (%p782_p3, %s781_s24), 0  ;;  %775 = sbr.rel (!%p772_p4) target bundleno = 508 (0x1fc), region = 154 }
 0x200   : >> { %s1058_s13 = sshll.u32 %s1559_s24, 3  ;;  %s1316_s15 = smov %s1559_s24  }
 0x201   : >> { %s786_s14 = scalar_lea.vmem %s767_s10, %s1058_s13 [#allocation4]   ;;  %s787_s12 = scalar_lea.vmem %s769_s11, %s1058_s13  }
 0x204 PF: > { %p15_p5 = scmp.ge.s32.totalorder %s1381_s28, 4   ;;  %s1551_s24 = smov %s1285_s25 }
 0x205   : > { %s1552_s25 = smov %s1389_s8  ;;  %s1553_s26 = smov %s1381_s28 }
 0x206   :  { %17 = sbr.rel (!%p15_p5) target bundleno = 2 (0x2), region = 165 }
 0x20b   :  { %803 = vsyncpa [#allocation3], 1 }
 0x20c   :  { %805 = vsyncpa [#allocation3 + $0x1], 1 }

</bundles_post_ra>
